<compile_context>
chip_gen: v7x
topology: tpu7x:2x2x1
jax: 0.10.0
libtpu: 0.0.40
codegen_flags: <defaults>
</compile_context>

<pallas_src>
import functools

import jax
import jax.numpy as jnp
from jax.experimental import pallas as pl
from jax.experimental.pallas import tpu as pltpu

EPS = 1e-5
NEG_SLOPE = 0.2
KH = KW = 4
LANE = 128


def _round_up(x, m):
    return (x + m - 1) // m * m


def _vmem_cap_bytes():
    """~75% of physical VMEM (generation-aware); conservative fallback."""
    try:
        info = pltpu.get_tpu_info()
        cap = int(getattr(info, "vmem_capacity_bytes", 0)) or 64 * 1024 * 1024
    except Exception:
        cap = 64 * 1024 * 1024
    return int(0.75 * cap)


_VMEM_CAP = _vmem_cap_bytes()


# ---------------------------------------------------------------------------
# Fused path: grid = (phase, m_tile), both "arbitrary".
#   phase 0: conv tile (bf16 x bf16 -> f32 on MXU) -> resident bf16 VMEM
#            scratch + streamed f32 moments; folded (scale, shift) at the end.
#   phase 1: y = LeakyReLU(conv * scale + shift) from the resident scratch.
# ---------------------------------------------------------------------------
def _fused_kernel(patch_ref, w_ref, gamma_ref, beta_ref, y_ref,
                  conv_scr, acc_ref, ss_ref, *, inv_count):
    phase = pl.program_id(0)
    i = pl.program_id(1)
    last = pl.num_programs(1) - 1

    @pl.when(jnp.logical_and(phase == 0, i == 0))
    def _init():
        acc_ref[...] = jnp.zeros_like(acc_ref)

    @pl.when(phase == 0)
    def _conv_and_stats():
        conv = jnp.dot(patch_ref[...], w_ref[...],
                       preferred_element_type=jnp.float32)   # (tile_m, c_pad)
        conv_scr[i] = conv.astype(conv_scr.dtype)             # bf16, stays in VMEM
        s1 = jnp.sum(conv, axis=0, keepdims=True)
        s2 = jnp.sum(conv * conv, axis=0, keepdims=True)
        # Single 2-row update instead of two masked 1-row RMWs.
        acc_ref[...] = acc_ref[...] + jnp.concatenate([s1, s2], axis=0)

    @pl.when(jnp.logical_and(phase == 0, i == last))
    def _finalize_stats():
        mean = acc_ref[0:1, :] * inv_count
        var = jnp.maximum(acc_ref[1:2, :] * inv_count - mean * mean, 0.0)
        inv_std = jax.lax.rsqrt(var + EPS)
        scale = gamma_ref[...] * inv_std
        shift = beta_ref[...] - mean * scale
        ss_ref[...] = jnp.concatenate([scale, shift], axis=0)

    @pl.when(phase == 1)
    def _normalize():
        t = (conv_scr[i].astype(jnp.float32) * ss_ref[0:1, :]
             + ss_ref[1:2, :])
        y_ref[...] = jnp.maximum(t, NEG_SLOPE * t).astype(y_ref.dtype)


# ---------------------------------------------------------------------------
# Two-pass fallback, pass 1: K-tiled conv (f32 VMEM accumulator) + streamed
# BN moments, finalized into folded (scale, shift).  conv written as bf16.
# ---------------------------------------------------------------------------
def _conv_stats_kernel(patch_ref, w_ref, gamma_ref, beta_ref,
                       conv_ref, ss_ref, cacc_ref, macc_ref, *, inv_count):
    i = pl.program_id(0)
    kk = pl.program_id(1)
    last_i = pl.num_programs(0) - 1
    last_k = pl.num_programs(1) - 1

    @pl.when(jnp.logical_and(i == 0, kk == 0))
    def _init_moments():
        macc_ref[...] = jnp.zeros_like(macc_ref)

    @pl.when(kk == 0)
    def _init_conv_acc():
        cacc_ref[...] = jnp.zeros_like(cacc_ref)

    cacc_ref[...] += jnp.dot(patch_ref[...], w_ref[...],
                             preferred_element_type=jnp.float32)

    @pl.when(kk == last_k)
    def _emit_tile():
        conv = cacc_ref[...]
        conv_ref[...] = conv.astype(conv_ref.dtype)            # bf16 to HBM
        s1 = jnp.sum(conv, axis=0, keepdims=True)
        s2 = jnp.sum(conv * conv, axis=0, keepdims=True)
        macc_ref[...] = macc_ref[...] + jnp.concatenate([s1, s2], axis=0)

    @pl.when(jnp.logical_and(i == last_i, kk == last_k))
    def _finalize():
        mean = macc_ref[0:1, :] * inv_count
        var = jnp.maximum(macc_ref[1:2, :] * inv_count - mean * mean, 0.0)
        inv_std = jax.lax.rsqrt(var + EPS)
        scale = gamma_ref[...] * inv_std
        shift = beta_ref[...] - mean * scale
        ss_ref[...] = jnp.concatenate([scale, shift], axis=0)


# ---------------------------------------------------------------------------
# Two-pass fallback, pass 2: y = LeakyReLU(conv * scale + shift), bf16 in/out.
# ---------------------------------------------------------------------------
def _norm_lrelu_kernel(conv_ref, ss_ref, out_ref):
    t = conv_ref[...].astype(jnp.float32) * ss_ref[0:1, :] + ss_ref[1:2, :]
    out_ref[...] = jnp.maximum(t, NEG_SLOPE * t).astype(out_ref.dtype)


def _im2col_nchw(x, stride, ho, wo):
    """(N, Cin, H, W) -> (N*Ho*Wo, Cin*KH*KW), K flattened as (Cin, kh, kw)."""
    n, c = x.shape[0], x.shape[1]
    cols = []
    for i in range(KH):
        for j in range(KW):
            cols.append(x[:, :, i:i + stride * ho:stride, j:j + stride * wo:stride])
    patches = jnp.stack(cols, axis=2)                 # (N, Cin, 16, Ho, Wo)
    patches = patches.transpose(0, 3, 4, 1, 2)        # (N, Ho, Wo, Cin, 16)
    return patches.reshape(n * ho * wo, c * KH * KW)


@functools.partial(jax.jit,
                   static_argnames=("stride", "channels_last", "force_two_pass"))
def cnn_block(x, weight, gamma, beta, stride=2, channels_last=False,
              force_two_pass=False):
    """x: (N, Cin, H, W) NCHW.  weight: (Cout, Cin, 4, 4) PyTorch layout."""
    n, cin, h, w = x.shape
    cout = weight.shape[0]
    ho = (h - KH) // stride + 1
    wo = (w - KW) // stride + 1
    m = n * ho * wo
    k = cin * KH * KW

    c_pad = _round_up(cout, LANE)
    k_full = _round_up(k, LANE)
    cap = _VMEM_CAP
    inv_count = 1.0 / float(m)

    # tile_m: multiples of 256 once m > 128 (keeps 256x256 MXUs full on
    # v6e/v7x); 128 only for tiny problems.
    if m <= 128:
        tile_m = 128
    elif m <= 4096:
        tile_m = 256
    else:
        tile_m = 512

    gamma_p = jnp.pad(gamma.astype(jnp.float32), (0, c_pad - cout)).reshape(1, c_pad)
    beta_p = jnp.pad(beta.astype(jnp.float32), (0, c_pad - cout)).reshape(1, c_pad)

    def _pack(k_pad, tm):
        m_pad = _round_up(m, tm)
        patches = _im2col_nchw(x, stride, ho, wo).astype(jnp.bfloat16)
        patches = jnp.pad(patches, ((0, m_pad - m), (0, k_pad - k)))
        w_flat = weight.reshape(cout, k).T.astype(jnp.bfloat16)   # (K, Cout)
        w_flat = jnp.pad(w_flat, ((0, k_pad - k), (0, c_pad - cout)))
        return m_pad, patches, w_flat

    def _fused_bytes(tm):
        m_pad = _round_up(m, tm)
        return (m_pad * c_pad * 2            # resident bf16 conv scratch
                + 2 * tm * k_full * 2        # double-buffered bf16 patch tiles
                + 2 * k_full * c_pad * 2     # double-buffered bf16 weights
                + 2 * tm * c_pad * 2         # double-buffered bf16 output tiles
                + 16 * c_pad * 4)            # gamma/beta/moments/scale-shift

    use_fused = (not force_two_pass) and _fused_bytes(tile_m) <= int(0.6 * cap)

    if use_fused:
        # ---- fused path: conv intermediate never leaves VMEM ----
        k_pad = k_full
        m_pad, patches, w_flat = _pack(k_pad, tile_m)
        n_tiles = m_pad // tile_m
        vmem_limit = int(min(cap, max(2 * _fused_bytes(tile_m), 32 * 1024 * 1024)))

        y2d = pl.pallas_call(
            functools.partial(_fused_kernel, inv_count=inv_count),
            out_shape=jax.ShapeDtypeStruct((m_pad, c_pad), jnp.bfloat16),
            grid=(2, n_tiles),
            in_specs=[
                # phase 0 streams patch tile i; phase 1 pins the last tile so
                # no extra patch DMAs happen while normalizing.
                pl.BlockSpec((tile_m, k_pad),
                             lambda p, i: ((1 - p) * i + p * (n_tiles - 1), 0)),
                pl.BlockSpec((k_pad, c_pad), lambda p, i: (0, 0)),
                pl.BlockSpec((1, c_pad), lambda p, i: (0, 0)),
                pl.BlockSpec((1, c_pad), lambda p, i: (0, 0)),
            ],
            # Output block stays at 0 during phase 0 (never written / never
            # flushed), then walks the M tiles during phase 1.
            out_specs=pl.BlockSpec((tile_m, c_pad), lambda p, i: (p * i, 0)),
            scratch_shapes=[
                pltpu.VMEM((n_tiles, tile_m, c_pad), jnp.bfloat16),  # conv
                pltpu.VMEM((2, c_pad), jnp.float32),                 # moments
                pltpu.VMEM((2, c_pad), jnp.float32),                 # scale/shift
            ],
            compiler_params=pltpu.CompilerParams(
                dimension_semantics=("arbitrary", "arbitrary"),
                vmem_limit_bytes=vmem_limit),
            cost_estimate=pl.CostEstimate(
                flops=2 * m_pad * k_pad * c_pad + 6 * m_pad * c_pad,
                transcendentals=c_pad,
                bytes_accessed=(m_pad * k_pad * 2 + k_pad * c_pad * 2
                                + m_pad * c_pad * 2)),
        )(patches, w_flat, gamma_p, beta_p)
    else:
        # ---- two-pass fallback: K-tiled conv+stats, then parallel normalize ----
        tile_k = k_full if k_full <= 512 else 512
        k_pad = _round_up(k, tile_k)

        def _pass1_bytes(tm):
            return (2 * tm * tile_k * 2       # bf16 patch tiles (double buffer)
                    + 2 * tile_k * c_pad * 2  # bf16 weight tiles
                    + tm * c_pad * 4          # f32 conv accumulator
                    + 2 * tm * c_pad * 2      # bf16 conv output tiles
                    + 16 * c_pad * 4)

        while tile_m > 128 and _pass1_bytes(tile_m) > int(0.8 * cap):
            tile_m //= 2

        m_pad, patches, w_flat = _pack(k_pad, tile_m)
        m_tiles = m_pad // tile_m
        k_tiles = k_pad // tile_k
        vmem_limit = int(min(cap, max(2 * _pass1_bytes(tile_m), 32 * 1024 * 1024)))

        conv, ss = pl.pallas_call(
            functools.partial(_conv_stats_kernel, inv_count=inv_count),
            out_shape=(
                jax.ShapeDtypeStruct((m_pad, c_pad), jnp.bfloat16),
                jax.ShapeDtypeStruct((2, c_pad), jnp.float32),
            ),
            grid=(m_tiles, k_tiles),
            in_specs=[
                pl.BlockSpec((tile_m, tile_k), lambda i, kk: (i, kk)),
                pl.BlockSpec((tile_k, c_pad), lambda i, kk: (kk, 0)),
                pl.BlockSpec((1, c_pad), lambda i, kk: (0, 0)),
                pl.BlockSpec((1, c_pad), lambda i, kk: (0, 0)),
            ],
            out_specs=(
                pl.BlockSpec((tile_m, c_pad), lambda i, kk: (i, 0)),
                pl.BlockSpec((2, c_pad), lambda i, kk: (0, 0)),
            ),
            scratch_shapes=[
                pltpu.VMEM((tile_m, c_pad), jnp.float32),   # conv accumulator
                pltpu.VMEM((2, c_pad), jnp.float32),        # moments
            ],
            compiler_params=pltpu.CompilerParams(
                dimension_semantics=("arbitrary", "arbitrary"),
                vmem_limit_bytes=vmem_limit),
            cost_estimate=pl.CostEstimate(
                flops=2 * m_pad * k_pad * c_pad,
                transcendentals=c_pad,
                bytes_accessed=(m_pad * k_pad * 2 + k_pad * c_pad * 2
                                + m_pad * c_pad * 2)),
        )(patches, w_flat, gamma_p, beta_p)

        # conv is consumed only here; safe to donate its buffer to the output.
        y2d = pl.pallas_call(
            _norm_lrelu_kernel,
            out_shape=jax.ShapeDtypeStruct((m_pad, c_pad), jnp.bfloat16),
            grid=(m_tiles,),
            in_specs=[
                pl.BlockSpec((tile_m, c_pad), lambda i: (i, 0)),
                pl.BlockSpec((2, c_pad), lambda i: (0, 0)),
            ],
            out_specs=pl.BlockSpec((tile_m, c_pad), lambda i: (i, 0)),
            input_output_aliases={0: 0},
            compiler_params=pltpu.CompilerParams(
                dimension_semantics=("parallel",),
                vmem_limit_bytes=vmem_limit),
            cost_estimate=pl.CostEstimate(
                flops=3 * m_pad * c_pad,
                transcendentals=0,
                bytes_accessed=2 * m_pad * c_pad * 2 + 2 * c_pad * 4),
        )(conv, ss)

    y = y2d[:m, :cout].reshape(n, ho, wo, cout)
    if not channels_last:
        # Chained blocks should pass channels_last=True and fold this
        # transpose into the next layer's packing to save one HBM round trip.
        y = jnp.transpose(y, (0, 3, 1, 2))
    return y.astype(x.dtype)


if __name__ == "__main__":
    def reference(x, weight, gamma, beta, stride):
        conv = jax.lax.conv_general_dilated(
            x, weight, (stride, stride), "VALID",
            dimension_numbers=("NCHW", "OIHW", "NCHW"))
        mean = conv.mean(axis=(0, 2, 3), keepdims=True)
        var = ((conv - mean) ** 2).mean(axis=(0, 2, 3), keepdims=True)
        y = (conv - mean) * jax.lax.rsqrt(var + EPS)
        y = y * gamma.reshape(1, -1, 1, 1) + beta.reshape(1, -1, 1, 1)
        return jnp.where(y >= 0, y, NEG_SLOPE * y)

    key = jax.random.PRNGKey(0)
    cases = [
        # (N, Cin, Cout, H=W, force_two_pass)
        (2, 4, 8, 16, False),    # fused path, single M tile
        (2, 8, 16, 38, False),   # fused path, multiple M tiles
        (2, 64, 8, 16, True),    # two-pass fallback with a K reduction axis
    ]
    for idx, (n, cin, cout, hw, force) in enumerate(cases):
        key, kx, kw, kg, kb = jax.random.split(key, 5)
        x = jax.random.normal(kx, (n, cin, hw, hw), dtype=jnp.float32)
        weight = 0.1 * jax.random.normal(kw, (cout, cin, KH, KW), dtype=jnp.float32)
        gamma = 1.0 + 0.1 * jax.random.normal(kg, (cout,), dtype=jnp.float32)
        beta = 0.1 * jax.random.normal(kb, (cout,), dtype=jnp.float32)

        y = cnn_block(x, weight, gamma, beta, stride=2, force_two_pass=force)
        jax.block_until_ready(y)

        oh = (hw - KH) // 2 + 1
        assert y.shape == (n, cout, oh, oh), (idx, y.shape)

        ref = reference(x, weight, gamma, beta, 2)
        err = float(jnp.max(jnp.abs(y - ref)))
        assert err < 1e-1, (idx, err)   # loose: bf16 MXU operands + bf16 conv buffer

    print("KERNEL_OK")
</pallas_src>

<mosaic_0001>
module attributes {stable_mosaic.version = 11 : i64} {
  func.func @_fused_kernel(%arg0: i32, %arg1: i32, %arg2: memref<128x128xbf16, #tpu.memory_space<vmem>>, %arg3: memref<128x128xbf16, #tpu.memory_space<vmem>>, %arg4: memref<1x128xf32, #tpu.memory_space<vmem>>, %arg5: memref<1x128xf32, #tpu.memory_space<vmem>>, %arg6: memref<128x128xbf16, #tpu.memory_space<vmem>>, %arg7: memref<1x128x128xbf16, #tpu.memory_space<vmem>>, %arg8: memref<2x128xf32, #tpu.memory_space<vmem>>, %arg9: memref<2x128xf32, #tpu.memory_space<vmem>>) attributes {dimension_semantics = [#tpu.dimension_semantics<arbitrary>, #tpu.dimension_semantics<arbitrary>], iteration_bounds = array<i64: 2, 1>, scalar_prefetch = 0 : i64, scratch_operands = 3 : i64, tpu.core_type = #tpu.core_type<tc>, window_params = [{transform_indices = @transform_0, window_bounds = array<i64: 128, 128>}, {pipeline_mode = #tpu.pipeline_mode<synchronous>, transform_indices = @transform_1, window_bounds = array<i64: 128, 128>}, {pipeline_mode = #tpu.pipeline_mode<synchronous>, transform_indices = @transform_2, window_bounds = array<i64: 1, 128>}, {pipeline_mode = #tpu.pipeline_mode<synchronous>, transform_indices = @transform_3, window_bounds = array<i64: 1, 128>}, {transform_indices = @transform_4, window_bounds = array<i64: 128, 128>}]} {
    %c0_i32 = arith.constant 0 : i32
    %0 = arith.cmpi eq, %arg0, %c0_i32 : i32
    %c0_i32_0 = arith.constant 0 : i32
    %1 = arith.cmpi eq, %arg1, %c0_i32_0 : i32
    %2 = arith.andi %0, %1 : i1
    %3 = arith.extui %2 : i1 to i32
    %c0_i32_1 = arith.constant 0 : i32
    %4 = arith.cmpi ne, %3, %c0_i32_1 : i32
    scf.if %4 {
      %cst = arith.constant 0.000000e+00 : f32
      %16 = vector.broadcast %cst : f32 to vector<2x128xf32>
      %c0 = arith.constant 0 : index
      %c0_8 = arith.constant 0 : index
      %17 = vector.load %arg8[%c0, %c0_8] : memref<2x128xf32, #tpu.memory_space<vmem>>, vector<2x128xf32>
      tpu.vector_store %arg8[%c0, %c0_8], %16 {strides = array<i32>} : memref<2x128xf32, #tpu.memory_space<vmem>>, vector<2x128xf32>,
    } else {
    }
    %c0_i32_2 = arith.constant 0 : i32
    %5 = arith.cmpi eq, %arg0, %c0_i32_2 : i32
    %6 = arith.extui %5 : i1 to i32
    %c0_i32_3 = arith.constant 0 : i32
    %7 = arith.cmpi ne, %6, %c0_i32_3 : i32
    scf.if %7 {
      %c0 = arith.constant 0 : index
      %c0_8 = arith.constant 0 : index
      %16 = vector.load %arg2[%c0, %c0_8] : memref<128x128xbf16, #tpu.memory_space<vmem>>, vector<128x128xbf16>
      %c0_9 = arith.constant 0 : index
      %c0_10 = arith.constant 0 : index
      %17 = vector.load %arg3[%c0_9, %c0_10] : memref<128x128xbf16, #tpu.memory_space<vmem>>, vector<128x128xbf16>
      %cst = arith.constant dense<0.000000e+00> : vector<128x128xf32>
      %18 = tpu.matmul %16, %17, %cst {dimension_numbers = #tpu.dot_dimension_numbers<[1], [0], [0], [1], [0, 0, 1, 1], [], []>} : vector<128x128xbf16>, vector<128x128xbf16>, vector<128x128xf32> -> vector<128x128xf32>
      %19 = arith.truncf %18 : vector<128x128xf32> to vector<128x128xbf16>
      %20 = arith.index_cast %arg1 : i32 to index
      %c0_11 = arith.constant 0 : index
      %c0_12 = arith.constant 0 : index
      %21 = vector.load %arg7[%20, %c0_11, %c0_12] : memref<1x128x128xbf16, #tpu.memory_space<vmem>>, vector<1x128x128xbf16>
      %22 = vector.shape_cast %21 : vector<1x128x128xbf16> to vector<128x128xbf16>
      %23 = vector.shape_cast %19 : vector<128x128xbf16> to vector<1x128x128xbf16>
      tpu.vector_store %arg7[%20, %c0_11, %c0_12], %23 {strides = array<i32>} : memref<1x128x128xbf16, #tpu.memory_space<vmem>>, vector<1x128x128xbf16>,
      %cst_13 = arith.constant dense<0.000000e+00> : vector<128xf32>
      %24 = vector.multi_reduction <add>, %18, %cst_13 [0] : vector<128x128xf32> to vector<128xf32>
      %25 = vector.shape_cast %24 : vector<128xf32> to vector<1x128xf32>
      %26 = arith.mulf %18, %18 : vector<128x128xf32>
      %cst_14 = arith.constant dense<0.000000e+00> : vector<128xf32>
      %27 = vector.multi_reduction <add>, %26, %cst_14 [0] : vector<128x128xf32> to vector<128xf32>
      %28 = vector.shape_cast %27 : vector<128xf32> to vector<1x128xf32>
      %c0_15 = arith.constant 0 : index
      %c0_16 = arith.constant 0 : index
      %29 = vector.load %arg8[%c0_15, %c0_16] : memref<2x128xf32, #tpu.memory_space<vmem>>, vector<2x128xf32>
      %30 = tpu.concatenate %25, %28 in 0 : vector<1x128xf32>, vector<1x128xf32> -> vector<2x128xf32>
      %31 = arith.addf %29, %30 : vector<2x128xf32>
      %c0_17 = arith.constant 0 : index
      %c0_18 = arith.constant 0 : index
      %32 = vector.load %arg8[%c0_17, %c0_18] : memref<2x128xf32, #tpu.memory_space<vmem>>, vector<2x128xf32>
      tpu.vector_store %arg8[%c0_17, %c0_18], %31 {strides = array<i32>} : memref<2x128xf32, #tpu.memory_space<vmem>>, vector<2x128xf32>,
    } else {
    }
    %c0_i32_4 = arith.constant 0 : i32
    %8 = arith.cmpi eq, %arg0, %c0_i32_4 : i32
    %c0_i32_5 = arith.constant 0 : i32
    %9 = arith.cmpi eq, %arg1, %c0_i32_5 : i32
    %10 = arith.andi %8, %9 : i1
    %11 = arith.extui %10 : i1 to i32
    %c0_i32_6 = arith.constant 0 : i32
    %12 = arith.cmpi ne, %11, %c0_i32_6 : i32
    scf.if %12 {
      %c0 = arith.constant 0 : index
      %c0_8 = arith.constant 0 : index
      %16 = vector.load %arg8[%c0, %c0_8] : memref<2x128xf32, #tpu.memory_space<vmem>>, vector<1x128xf32>
      %cst = arith.constant 0.0102040814 : f32
      %17 = vector.broadcast %cst : f32 to vector<1x128xf32>
      %18 = arith.mulf %16, %17 : vector<1x128xf32>
      %c1 = arith.constant 1 : index
      %c0_9 = arith.constant 0 : index
      %19 = vector.load %arg8[%c1, %c0_9] : memref<2x128xf32, #tpu.memory_space<vmem>>, vector<1x128xf32>
      %cst_10 = arith.constant 0.0102040814 : f32
      %20 = vector.broadcast %cst_10 : f32 to vector<1x128xf32>
      %21 = arith.mulf %19, %20 : vector<1x128xf32>
      %22 = arith.mulf %18, %18 : vector<1x128xf32>
      %23 = arith.subf %21, %22 : vector<1x128xf32>
      %cst_11 = arith.constant 0.000000e+00 : f32
      %24 = vector.broadcast %cst_11 : f32 to vector<1x128xf32>
      %25 = arith.maximumf %23, %24 : vector<1x128xf32>
      %cst_12 = arith.constant 9.99999974E-6 : f32
      %26 = vector.broadcast %cst_12 : f32 to vector<1x128xf32>
      %27 = arith.addf %25, %26 : vector<1x128xf32>
      %28 = math.rsqrt %27 : vector<1x128xf32>
      %c0_13 = arith.constant 0 : index
      %c0_14 = arith.constant 0 : index
      %29 = vector.load %arg4[%c0_13, %c0_14] : memref<1x128xf32, #tpu.memory_space<vmem>>, vector<1x128xf32>
      %30 = arith.mulf %29, %28 : vector<1x128xf32>
      %c0_15 = arith.constant 0 : index
      %c0_16 = arith.constant 0 : index
      %31 = vector.load %arg5[%c0_15, %c0_16] : memref<1x128xf32, #tpu.memory_space<vmem>>, vector<1x128xf32>
      %32 = arith.mulf %18, %30 : vector<1x128xf32>
      %33 = arith.subf %31, %32 : vector<1x128xf32>
      %34 = tpu.concatenate %30, %33 in 0 : vector<1x128xf32>, vector<1x128xf32> -> vector<2x128xf32>
      %c0_17 = arith.constant 0 : index
      %c0_18 = arith.constant 0 : index
      %35 = vector.load %arg9[%c0_17, %c0_18] : memref<2x128xf32, #tpu.memory_space<vmem>>, vector<2x128xf32>
      tpu.vector_store %arg9[%c0_17, %c0_18], %34 {strides = array<i32>} : memref<2x128xf32, #tpu.memory_space<vmem>>, vector<2x128xf32>,
    } else {
    }
    %c1_i32 = arith.constant 1 : i32
    %13 = arith.cmpi eq, %arg0, %c1_i32 : i32
    %14 = arith.extui %13 : i1 to i32
    %c0_i32_7 = arith.constant 0 : i32
    %15 = arith.cmpi ne, %14, %c0_i32_7 : i32
    scf.if %15 {
      %16 = arith.index_cast %arg1 : i32 to index
      %c0 = arith.constant 0 : index
      %c0_8 = arith.constant 0 : index
      %17 = vector.load %arg7[%16, %c0, %c0_8] : memref<1x128x128xbf16, #tpu.memory_space<vmem>>, vector<1x128x128xbf16>
      %18 = vector.shape_cast %17 : vector<1x128x128xbf16> to vector<128x128xbf16>
      %19 = arith.extf %18 : vector<128x128xbf16> to vector<128x128xf32>
      %c0_9 = arith.constant 0 : index
      %c0_10 = arith.constant 0 : index
      %20 = vector.load %arg9[%c0_9, %c0_10] : memref<2x128xf32, #tpu.memory_space<vmem>>, vector<1x128xf32>
      %21 = vector.broadcast %20 : vector<1x128xf32> to vector<128x128xf32>
      %22 = arith.mulf %19, %21 : vector<128x128xf32>
      %c1 = arith.constant 1 : index
      %c0_11 = arith.constant 0 : index
      %23 = vector.load %arg9[%c1, %c0_11] : memref<2x128xf32, #tpu.memory_space<vmem>>, vector<1x128xf32>
      %24 = vector.broadcast %23 : vector<1x128xf32> to vector<128x128xf32>
      %25 = arith.addf %22, %24 : vector<128x128xf32>
      %cst = arith.constant 2.000000e-01 : f32
      %26 = vector.broadcast %cst : f32 to vector<128x128xf32>
      %27 = arith.mulf %26, %25 : vector<128x128xf32>
      %28 = arith.maximumf %25, %27 : vector<128x128xf32>
      %29 = arith.truncf %28 : vector<128x128xf32> to vector<128x128xbf16>
      %c0_12 = arith.constant 0 : index
      %c0_13 = arith.constant 0 : index
      %30 = vector.load %arg6[%c0_12, %c0_13] : memref<128x128xbf16, #tpu.memory_space<vmem>>, vector<128x128xbf16>
      tpu.vector_store %arg6[%c0_12, %c0_13], %29 {strides = array<i32>} : memref<128x128xbf16, #tpu.memory_space<vmem>>, vector<128x128xbf16>,
    } else {
    }
    return
  }
  func.func @transform_0(%arg0: i32, %arg1: i32) -> (i32, i32) {
    %c1_i32 = arith.constant 1 : i32
    %0 = arith.subi %c1_i32, %arg0 : i32
    %1 = arith.muli %0, %arg1 : i32
    %c0_i32 = arith.constant 0 : i32
    %2 = arith.muli %arg0, %c0_i32 : i32
    %3 = arith.addi %1, %2 : i32
    %c0_i32_0 = arith.constant 0 : i32
    %c0_i32_1 = arith.constant 0 : i32
    return %3, %c0_i32_0 : i32, i32
  }
  func.func @transform_1(%arg0: i32, %arg1: i32) -> (i32, i32) {
    %c0_i32 = arith.constant 0 : i32
    %c0_i32_0 = arith.constant 0 : i32
    %c0_i32_1 = arith.constant 0 : i32
    return %c0_i32, %c0_i32_0 : i32, i32
  }
  func.func @transform_2(%arg0: i32, %arg1: i32) -> (i32, i32) {
    %c0_i32 = arith.constant 0 : i32
    %c0_i32_0 = arith.constant 0 : i32
    %c0_i32_1 = arith.constant 0 : i32
    return %c0_i32, %c0_i32_0 : i32, i32
  }
  func.func @transform_3(%arg0: i32, %arg1: i32) -> (i32, i32) {
    %c0_i32 = arith.constant 0 : i32
    %c0_i32_0 = arith.constant 0 : i32
    %c0_i32_1 = arith.constant 0 : i32
    return %c0_i32, %c0_i32_0 : i32, i32
  }
  func.func @transform_4(%arg0: i32, %arg1: i32) -> (i32, i32) {
    %0 = arith.muli %arg0, %arg1 : i32
    %c0_i32 = arith.constant 0 : i32
    %c0_i32_0 = arith.constant 0 : i32
    return %0, %c0_i32 : i32, i32
  }
}

</mosaic_0001>

<bundles_post_ra>
// kernel: cnn_block.1
= control target key start
LH: loop header
LB: loop body
LE: loop exit
PB: predicated region body
PF: predicated region fallthrough
CT: control target
= control target key end

     0   :  { %s1100_s15 = smov 0   ;;  %s1102_s16 = smov 0   ;;  %s1250_s0 = inlined_call_operand.vmem [shape: bf16[128,128], index: 0, kind: input, shape index: {}]   ;;  %s1251_s1 = inlined_call_operand.vmem [shape: bf16[128,128], index: 1, kind: input, shape index: {}]   ;;  %s1252_s2 = inlined_call_operand.vmem [shape: f32[1,128], index: 2, kind: input, shape index: {}]   ;;  %s1253_s3 = inlined_call_operand.vmem [shape: f32[1,128], index: 3, kind: input, shape index: {}]   ;;  %s1254_s4 = inlined_call_operand.vmem [shape: bf16[128,128], index: 4, kind: output, shape index: {}]  }
   0x1   :  { %s1104_s17 = smov 0  }
   0x2 LB: > { %s26_s18 = sadd.s32 1, %s1068_s16  ;;  %p837_p0 = scmp.ge.s32.totalorder %s1072_s17, 1  ;;  %s1072_s17 = sphi %s1104_s17, %s14_s17   ;;  %s1068_s16 = sphi %s1102_s16, %s1256_s16   ;;  %s1064_s15 = sphi %s1100_s15, %s1255_s15  }
   0x3   : > { %p28_p1 = scmp.ge.s32.totalorder %s26_s18, 2  ;;  %p185_p2 = scmp.lt.s32.totalorder %s1072_s17, 3 }
   0x5   : > { %s1258_s18 = smov (%p28_p1, %s26_s18), 0  ;;  %p186_p3 = pnand %p837_p0, %p185_p2 }
   0x6   : > { %p233_p4 = scmp.eq.s32.totalorder (!%p186_p3), %s1064_s15, 0 }
   0x7   : > { %189 = sbr.rel (%p186_p3) target bundleno = 387 (0x183), region = 36 }
   0xe   : > { %238 = sbr.rel (!%p233_p4) target bundleno = 21 (0x15), region = 40  ;;  %v1074_v0 = vmov (%p233_p4), 0.0  }
   0xf   : > { %239 = vst [vmem:[#allocation3] sm:$0x3] (%p233_p4), %v1074_v0 }
  0x15 PF: > { %p839_p5 = scmp.ne.s32.totalorder %s1064_s15, 0 }
  0x16   : > { %v1032_v1 = vld [vmem:[%s1251_s1] sm:$0xff] (!%p839_p5)   ;;  %v1033_v2 = vld [vmem:[%s1251_s1 + $0x8] sm:$0xff] (!%p839_p5)   ;;  %v1034_v3 = vld [vmem:[%s1251_s1 + $0x10] sm:$0xff] (!%p839_p5)   ;;  %vm546_vm0 = vcmask (!%p839_p5), 1040384  }
  0x17   : > { %242 = sbr.rel (%p839_p5) target bundleno = 318 (0x13e), region = 44  ;;  %959 = vmatprep.subr.bf16.mxu0 (!%p839_p5), %v1032_v1  ;;  %991 = vmatprep.subr.bf16.mxu1 (!%p839_p5), %v1032_v1  ;;  %v1035_v4 = vld [vmem:[%s1251_s1 + $0x18] sm:$0xff] (!%p839_p5)   ;;  %v1040_v5 = vld [vmem:[%s1250_s0] sm:$0xff] (!%p839_p5)   ;;  %v1037_v8 = vld [vmem:[%s1251_s1 + $0x28] sm:$0xff] (!%p839_p5)  }
  0x18   : > { %960 = vmatpush3.bf16.msra.mxu0 (!%p839_p5), %v1032_v1  ;;  %999 = vmatpush3.bf16.msra.mxu1 (!%p839_p5), %v1032_v1  ;;  %v1036_v6 = vld [vmem:[%s1251_s1 + $0x20] sm:$0xff] (!%p839_p5)   ;;  %v1038_v9 = vld [vmem:[%s1251_s1 + $0x30] sm:$0xff] (!%p839_p5)   ;;  %v1039_v10 = vld [vmem:[%s1251_s1 + $0x38] sm:$0xff] (!%p839_p5)  }
  0x19   : > { %961 = vmatprep.subr.bf16.mxu0 (!%p839_p5), %v1033_v2  ;;  %992 = vmatprep.subr.bf16.mxu1 (!%p839_p5), %v1033_v2  ;;  %v1044_v7 = vld [vmem:[%s1250_s0 + $0x20] sm:$0xff] (!%p839_p5)   ;;  %v1041_v11 = vld [vmem:[%s1250_s0 + $0x8] sm:$0xff] (!%p839_p5)   ;;  %v1042_v13 = vld [vmem:[%s1250_s0 + $0x10] sm:$0xff] (!%p839_p5)  }
  0x1a   : > { %975 = vmatprep.mubr.bf16.mxu0 (!%p839_p5), %v1040_v5  ;;  %983 = vmatprep.mubr.bf16.mxu1 (!%p839_p5), %v1044_v7  ;;  %v1045_v12 = vld [vmem:[%s1250_s0 + $0x28] sm:$0xff] (!%p839_p5)   ;;  %v1046_v14 = vld [vmem:[%s1250_s0 + $0x30] sm:$0xff] (!%p839_p5)   ;;  %v1043_v15 = vld [vmem:[%s1250_s0 + $0x18] sm:$0xff] (!%p839_p5)  }
  0x1b   : > { %v1047_v16 = vld [vmem:[%s1250_s0 + $0x38] sm:$0xff] (!%p839_p5)  }
  0x1c   : > { %962 = vmatpush3.bf16.msra.mxu0 (!%p839_p5), %v1033_v2  ;;  %1000 = vmatpush3.bf16.msra.mxu1 (!%p839_p5), %v1033_v2 }
  0x1d   : > { %963 = vmatprep.subr.bf16.mxu0 (!%p839_p5), %v1034_v3  ;;  %993 = vmatprep.subr.bf16.mxu1 (!%p839_p5), %v1034_v3 }
  0x20   : > { %964 = vmatpush3.bf16.msra.mxu0 %v1034_v3  ;;  %1001 = vmatpush3.bf16.msra.mxu1 %v1034_v3 }
  0x21   : > { %965 = vmatprep.subr.bf16.mxu0 %v1035_v4  ;;  %994 = vmatprep.subr.bf16.mxu1 %v1035_v4 }
  0x24   : > { %966 = vmatpush3.bf16.msra.mxu0 %v1035_v4  ;;  %1002 = vmatpush3.bf16.msra.mxu1 %v1035_v4 }
  0x25   : > { %967 = vmatprep.subr.bf16.mxu0 %v1036_v6  ;;  %995 = vmatprep.subr.bf16.mxu1 %v1036_v6 }
  0x28   : > { %968 = vmatpush3.bf16.msra.mxu0 %v1036_v6  ;;  %1003 = vmatpush3.bf16.msra.mxu1 %v1036_v6 }
  0x29   : > { %969 = vmatprep.subr.bf16.mxu0 %v1037_v8  ;;  %996 = vmatprep.subr.bf16.mxu1 %v1037_v8 }
  0x2c   : > { %970 = vmatpush3.bf16.msra.mxu0 %v1037_v8  ;;  %1004 = vmatpush3.bf16.msra.mxu1 %v1037_v8 }
  0x2d   : > { %971 = vmatprep.subr.bf16.mxu0 %v1038_v9  ;;  %997 = vmatprep.subr.bf16.mxu1 %v1038_v9 }
  0x30   : > { %972 = vmatpush3.bf16.msra.mxu0 %v1038_v9  ;;  %1005 = vmatpush3.bf16.msra.mxu1 %v1038_v9 }
  0x31   : > { %973 = vmatprep.subr.bf16.mxu0 %v1039_v10  ;;  %998 = vmatprep.subr.bf16.mxu1 %v1039_v10 }
  0x34   : > { %974 = vmatpush3.bf16.msra.mxu0 %v1039_v10  ;;  %1006 = vmatpush3.bf16.msra.mxu1 %v1039_v10 }
  0x37   : > { %976 = vmatmul.mubr.bf16.vlgmr.msra.gmra.mrb[0].mxu0 %v1041_v11  ;;  %984 = vmatmul.mubr.bf16.vlgmr.msra.gmra.mrb[0].mxu1 %v1045_v12 }
  0x38   : > { %979 = vmatprep.mubr.bf16.mxu0 %v1042_v13  ;;  %987 = vmatprep.mubr.bf16.mxu1 %v1046_v14 }
  0x3f   : > { %980 = vmatmul.mubr.bf16.gmra.mrb[4].mxu0 %v1043_v15  ;;  %988 = vmatmul.mubr.bf16.gmra.mrb[4].mxu1 %v1047_v16 }
 0x10a   : > { %v977_v17 = vpop.f32.mrb[0].mxu0  ;;  %v985_v18 = vpop.f32.mrb[0].mxu1 }
 0x10b   : > { %v405_v19 = vpop.f32.mrb[1].mxu0  ;;  %v437_v20 = vpop.f32.mrb[1].mxu1  ;;  %v510_v32 = vmul.f32 %v977_v17, %v977_v17  ;;  %v518_v4 = vmul.f32 %v985_v18, %v985_v18 }
 0x10c   : > { %v978_v21 = vpop.f32.mrb[2].mxu0  ;;  %v986_v22 = vpop.f32.mrb[2].mxu1  ;;  %v508_v23 = vmul.f32 %v405_v19, %v405_v19  ;;  %v516_v62 = vmul.f32 %v437_v20, %v437_v20 }
 0x10d   : > { %v469_v24 = vpack.c.bf16 %v978_v21, %v977_v17  ;;  %v408_v25 = vpop.f32.mrb[3].mxu0  ;;  %v473_v26 = vpack.c.bf16 %v986_v22, %v985_v18  ;;  %v440_v27 = vpop.f32.mrb[3].mxu1  ;;  %v511_v35 = vmul.f32 %v978_v21, %v978_v21  ;;  %v519_v7 = vmul.f32 %v986_v22, %v986_v22 }
 0x10e   : > { %v468_v28 = vpack.c.bf16 %v408_v25, %v405_v19  ;;  %v487_v29 = vadd.f32 %v408_v25, %v405_v19  ;;  %v509_v30 = vmul.f32 %v408_v25, %v408_v25  ;;  %v472_v31 = vpack.c.bf16 %v440_v27, %v437_v20 }
 0x10f   : > { %480 = vst [vmem:[#allocation2 + $0x8] sm:$0xff] %v469_v24  ;;  %484 = vst [vmem:[#allocation2 + $0x28] sm:$0xff] %v473_v26  ;;  %v517_v3 = vmul.f32 %v440_v27, %v440_v27 }
 0x110   : > { %479 = vst [vmem:[#allocation2] sm:$0xff] %v468_v28  ;;  %v488_v33 = vadd.f32 %v977_v17, %v487_v29  ;;  %v524_v34 = vadd.f32 %v509_v30, %v508_v23  ;;  %483 = vst [vmem:[#allocation2 + $0x20] sm:$0xff] %v472_v31 }
 0x112   : > { %v525_v36 = vadd.f32 %v524_v34, %v510_v32  ;;  %v981_v37 = vpop.f32.mrb[4].mxu0  ;;  %v489_v38 = vadd.f32 %v978_v21, %v488_v33  ;;  %v989_v39 = vpop.f32.mrb[4].mxu1 }
 0x113   : > { %v421_v40 = vpop.f32.mrb[5].mxu0  ;;  %v453_v41 = vpop.f32.mrb[5].mxu1  ;;  %v514_v56 = vmul.f32 %v981_v37, %v981_v37  ;;  %v522_v16 = vmul.f32 %v989_v39, %v989_v39 }
 0x114   : > { %v490_v42 = vadd.f32 %v489_v38, %v421_v40  ;;  %v512_v43 = vmul.f32 %v421_v40, %v421_v40  ;;  %v526_v44 = vadd.f32 %v525_v36, %v511_v35  ;;  %v982_v45 = vpop.f32.mrb[6].mxu0  ;;  %v990_v46 = vpop.f32.mrb[6].mxu1  ;;  %v520_v10 = vmul.f32 %v453_v41, %v453_v41  ;;  %v545_v35 = vld [vmem:[#allocation3] sm:$0x3] }
 0x115   : > { %v471_v47 = vpack.c.bf16 %v982_v45, %v981_v37  ;;  %v424_v48 = vpop.f32.mrb[7].mxu0  ;;  %v475_v49 = vpack.c.bf16 %v990_v46, %v989_v39  ;;  %v456_v50 = vpop.f32.mrb[7].mxu1  ;;  %v515_v59 = vmul.f32 %v982_v45, %v982_v45 }
 0x116   : > { %v527_v51 = vadd.f32 %v526_v44, %v512_v43  ;;  %v470_v52 = vpack.c.bf16 %v424_v48, %v421_v40  ;;  %v491_v53 = vadd.f32 %v490_v42, %v424_v48  ;;  %v513_v54 = vmul.f32 %v424_v48, %v424_v48 }
 0x117   : > { %482 = vst [vmem:[#allocation2 + $0x18] sm:$0xff] %v471_v47  ;;  %486 = vst [vmem:[#allocation2 + $0x38] sm:$0xff] %v475_v49  ;;  %v474_v55 = vpack.c.bf16 %v456_v50, %v453_v41  ;;  %v521_v15 = vmul.f32 %v456_v50, %v456_v50 }
 0x118   : > { %481 = vst [vmem:[#allocation2 + $0x10] sm:$0xff] %v470_v52  ;;  %v492_v57 = vadd.f32 %v981_v37, %v491_v53  ;;  %v528_v58 = vadd.f32 %v527_v51, %v513_v54 }
 0x119   : > { %485 = vst [vmem:[#allocation2 + $0x30] sm:$0xff] %v474_v55 }
 0x11a   : > { %v529_v60 = vadd.f32 %v528_v58, %v514_v56  ;;  %v493_v61 = vadd.f32 %v982_v45, %v492_v57 }
 0x11c   : > { %v494_v63 = vadd.f32 %v493_v61, %v437_v20  ;;  %v530_v0 = vadd.f32 %v529_v60, %v515_v59  ;;  %v523_v20 = vmul.f32 %v990_v46, %v990_v46 }
 0x11e   : > { %v531_v1 = vadd.f32 %v530_v0, %v516_v62  ;;  %v495_v2 = vadd.f32 %v494_v63, %v440_v27 }
 0x120   : > { %v496_v5 = vadd.f32 %v985_v18, %v495_v2  ;;  %v532_v6 = vadd.f32 %v531_v1, %v517_v3 }
 0x122   : > { %v533_v8 = vadd.f32 %v532_v6, %v518_v4  ;;  %v497_v9 = vadd.f32 %v986_v22, %v496_v5 }
 0x124   : > { %v498_v11 = vadd.f32 %v497_v9, %v453_v41  ;;  %v534_v12 = vadd.f32 %v533_v8, %v519_v7 }
 0x126   : > { %v535_v13 = vadd.f32 %v534_v12, %v520_v10  ;;  %v499_v14 = vadd.f32 %v498_v11, %v456_v50 }
 0x128   : > { %v500_v17 = vadd.f32 %v989_v39, %v499_v14  ;;  %v536_v19 = vadd.f32 %v535_v13, %v521_v15 }
 0x12a   : > { %v501_v21 = vadd.f32 %v990_v46, %v500_v17  ;;  %v537_v23 = vadd.f32 %v536_v19, %v522_v16 }
 0x12c   : > { %v502_v24 = vrot.slane %v501_v21, 4  ;;  %v538_v25 = vadd.f32 %v537_v23, %v523_v20 }
 0x12e   : > { %v503_v26 = vadd.f32 %v502_v24, %v501_v21  ;;  %v539_v18 = vrot.slane %v538_v25, 4 }
 0x130   : > { %v504_v27 = vrot.slane %v503_v26, 2  ;;  %v540_v28 = vadd.f32 %v539_v18, %v538_v25 }
 0x132   : > { %v505_v29 = vadd.f32 %v504_v27, %v503_v26  ;;  %v541_v22 = vrot.slane %v540_v28, 2 }
 0x134   : > { %v506_v30 = vrot.slane %v505_v29, 1  ;;  %v542_v31 = vadd.f32 %v541_v22, %v540_v28 }
 0x136   : > { %v543_v32 = vrot.slane %v542_v31, 1  ;;  %v507_v33 = vadd.f32 %v506_v30, %v505_v29 }
 0x138   : > { %v544_v34 = vadd.f32 %v543_v32, %v542_v31 }
 0x13a   : > { %v547_v36 = vsel %vm546_vm0, %v507_v33, %v544_v34 }
 0x13b   : > { %v548_v37 = vadd.f32 %v547_v36, %v545_v35 }
 0x13d   : > { %549 = vst [vmem:[#allocation3] sm:$0x3] %v548_v37 }
 0x13e PF: > { %551 = sbr.rel (!%p233_p4) target bundleno = 356 (0x164), region = 48  ;;  %v567_v46 = vlaneseq (%p233_p4)  ;;  %v561_v47 = vld [vmem:[%s1252_s2] sm:$0x1] (%p233_p4)  ;;  %vm572_vm1 = vcmask (%p233_p4), 1040384  }
 0x13f   : > { %v563_v51 = vld [vmem:[%s1253_s3] sm:$0x1] (%p233_p4) }
 0x140   : > { %v568_v48 = vshrl.u32 (%p233_p4), %v567_v46, 7 }
 0x142   : > { %v569_v53 = vsub.s32 (%p233_p4), 0, %v568_v48 }
 0x144   : > { %v552_v38 = vld [vmem:[#allocation3] sm:$0x1] (%p233_p4)  ;;  %v554_v39 = vld [vmem:[#allocation3 + $0x1] sm:$0x1] (%p233_p4) }
 0x145   : > { %v553_v40 = vmul.f32 0.010204081, %v552_v38  ;;  %v555_v41 = vmul.f32 0.010204081, %v554_v39 }
 0x147   : > { %v556_v42 = vmul.f32 %v553_v40, %v553_v40 }
 0x149   : > { %v557_v43 = vsub.f32 %v555_v41, %v556_v42 }
 0x14b   : > { %v558_v44 = vmax.f32 %v557_v43, 0.0 }
 0x14d   : > { %v559_v45 = vadd.f32 1e-05, %v558_v44 }
 0x14f   : > { %1048 = vrsqrt.f32 %v559_v45 }
 0x159   : > { %v1049_v49 = vpop.eup %1048 }
 0x15a   : > { %v562_v50 = vmul.f32 %v1049_v49, %v561_v47 }
 0x15c   : > { %v564_v52 = vmul.f32 %v562_v50, %v553_v40 }
 0x15e   : > { %v565_v54 = vsub.f32 %v563_v51, %v564_v52 }
 0x160   : > { %v570_v55 = vrot.slane %v565_v54, %v569_v53 }
 0x162   : > { %v573_v56 = vsel %vm572_vm1, %v562_v50, %v570_v55 }
 0x163   : > { %574 = vst [vmem:[#allocation4] sm:$0x3] %v573_v56 }
 0x164 PF: > { %p856_p6 = scmp.ne.s32.totalorder %s1064_s15, 1 }
 0x165   : > { %v582_v57 = vld [vmem:[#allocation2] sm:$0xff] (!%p856_p6)  ;;  %v583_v61 = vld [vmem:[#allocation2 + $0x8] sm:$0xff] (!%p856_p6)  ;;  %v584_v62 = vld [vmem:[#allocation2 + $0x10] sm:$0xff] (!%p856_p6) }
 0x166   : > { %578 = sbr.rel (%p856_p6) target bundleno = 387 (0x183), region = 52  ;;  %v590_v59 = vunpack.c.l.bf16 (!%p856_p6), %v582_v57  ;;  %v591_v60 = vunpack.c.h.bf16 (!%p856_p6), %v582_v57  ;;  %v585_v63 = vld [vmem:[#allocation2 + $0x18] sm:$0xff] (!%p856_p6)  ;;  %v592_v1 = vunpack.c.l.bf16 (!%p856_p6), %v583_v61  ;;  %v593_v2 = vunpack.c.h.bf16 (!%p856_p6), %v583_v61  ;;  %v586_v17 = vld [vmem:[#allocation2 + $0x20] sm:$0xff] (!%p856_p6)  ;;  %v587_v34 = vld [vmem:[#allocation2 + $0x28] sm:$0xff] (!%p856_p6) }
 0x167   : > { %v594_v3 = vunpack.c.l.bf16 (!%p856_p6), %v584_v62  ;;  %v595_v4 = vunpack.c.h.bf16 (!%p856_p6), %v584_v62  ;;  %v596_v7 = vunpack.c.l.bf16 (!%p856_p6), %v585_v63  ;;  %v597_v8 = vunpack.c.h.bf16 (!%p856_p6), %v585_v63  ;;  %v588_v39 = vld [vmem:[#allocation2 + $0x30] sm:$0xff] (!%p856_p6)  ;;  %v589_v48 = vld [vmem:[#allocation2 + $0x38] sm:$0xff] (!%p856_p6) }
 0x168   : > { %v598_v22 = vunpack.c.l.bf16 (!%p856_p6), %v586_v17  ;;  %v599_v43 = vunpack.c.h.bf16 (!%p856_p6), %v586_v17  ;;  %v600_v47 = vunpack.c.l.bf16 (!%p856_p6), %v587_v34  ;;  %v601_v51 = vunpack.c.h.bf16 (!%p856_p6), %v587_v34 }
 0x169   : > { %v602_v52 = vunpack.c.l.bf16 (!%p856_p6), %v588_v39  ;;  %v603_v56 = vunpack.c.h.bf16 (!%p856_p6), %v588_v39  ;;  %v604_v61 = vunpack.c.l.bf16 (!%p856_p6), %v589_v48 }
 0x16a   : > { %v1181_v58 = vld [vmem:[#allocation4] ss:$0 sm:$0xff] (!%p856_p6)  ;;  %v1183_v0 = vld [vmem:[#allocation4 + $0x1] ss:$0 sm:$0xff] (!%p856_p6) }
 0x16b   : > { %v611_v5 = vmul.f32 (!%p856_p6), %v1181_v58, %v590_v59  ;;  %v612_v6 = vmul.f32 (!%p856_p6), %v1181_v58, %v591_v60  ;;  %v613_v9 = vmul.f32 (!%p856_p6), %v1181_v58, %v592_v1  ;;  %v614_v10 = vmul.f32 (!%p856_p6), %v1181_v58, %v593_v2 }
 0x16c   : > { %v615_v11 = vmul.f32 (!%p856_p6), %v1181_v58, %v594_v3  ;;  %v616_v12 = vmul.f32 (!%p856_p6), %v1181_v58, %v595_v4  ;;  %v617_v15 = vmul.f32 (!%p856_p6), %v1181_v58, %v596_v7  ;;  %v618_v16 = vmul.f32 (!%p856_p6), %v1181_v58, %v597_v8 }
 0x16d   : > { %v632_v13 = vadd.f32 %v1183_v0, %v611_v5  ;;  %v633_v14 = vadd.f32 %v1183_v0, %v612_v6  ;;  %v634_v19 = vadd.f32 %v1183_v0, %v613_v9  ;;  %v635_v20 = vadd.f32 %v1183_v0, %v614_v10 }
 0x16e   : > { %v636_v21 = vadd.f32 %v1183_v0, %v615_v11  ;;  %v637_v23 = vadd.f32 %v1183_v0, %v616_v12  ;;  %v638_v26 = vadd.f32 %v1183_v0, %v617_v15  ;;  %v639_v18 = vadd.f32 %v1183_v0, %v618_v16 }
 0x16f   : > { %v648_v24 = vmul.f32 0.2, %v632_v13  ;;  %v649_v25 = vmul.f32 0.2, %v633_v14  ;;  %v650_v27 = vmul.f32 0.2, %v634_v19  ;;  %v619_v46 = vmul.f32 %v1181_v58, %v598_v22 }
 0x170   : > { %v651_v28 = vmul.f32 0.2, %v635_v20  ;;  %v652_v29 = vmul.f32 0.2, %v636_v21  ;;  %v653_v32 = vmul.f32 0.2, %v637_v23  ;;  %v620_v50 = vmul.f32 %v1181_v58, %v599_v43 }
 0x171   : > { %v664_v30 = vmax.f32 %v632_v13, %v648_v24  ;;  %v665_v31 = vmax.f32 %v633_v14, %v649_v25  ;;  %v654_v33 = vmul.f32 0.2, %v638_v26  ;;  %v666_v35 = vmax.f32 %v634_v19, %v650_v27 }
 0x172   : > { %v667_v36 = vmax.f32 %v635_v20, %v651_v28  ;;  %v668_v37 = vmax.f32 %v636_v21, %v652_v29  ;;  %v655_v38 = vmul.f32 0.2, %v639_v18  ;;  %v669_v41 = vmax.f32 %v637_v23, %v653_v32 }
 0x173   : > { %v899_v40 = vpack.c.bf16 %v665_v31, %v664_v30  ;;  %v670_v42 = vmax.f32 %v638_v26, %v654_v33  ;;  %v640_v54 = vadd.f32 %v1183_v0, %v619_v46  ;;  %v621_v55 = vmul.f32 %v1181_v58, %v600_v47 }
 0x174   : > { %v904_v44 = vpack.c.bf16 %v667_v36, %v666_v35  ;;  %v671_v45 = vmax.f32 %v639_v18, %v655_v38  ;;  %v909_v49 = vpack.c.bf16 %v669_v41, %v668_v37  ;;  %v641_v57 = vadd.f32 %v1183_v0, %v620_v50 }
 0x175   : > { %900 = vst [vmem:[%s1254_s4] sm:$0xff] %v899_v40   ;;  %v622_v59 = vmul.f32 %v1181_v58, %v601_v51  ;;  %v623_v60 = vmul.f32 %v1181_v58, %v602_v52  ;;  %v656_v62 = vmul.f32 0.2, %v640_v54  ;;  %v642_v63 = vadd.f32 %v1183_v0, %v621_v55 }
 0x176   : > { %936 = vst [vmem:[%s1254_s4 + $0x8] sm:$0xff] %v904_v44   ;;  %v914_v53 = vpack.c.bf16 %v671_v45, %v670_v42  ;;  %937 = vst [vmem:[%s1254_s4 + $0x10] sm:$0xff] %v909_v49   ;;  %v624_v1 = vmul.f32 %v1181_v58, %v603_v56  ;;  %v605_v2 = vunpack.c.h.bf16 %v589_v48  ;;  %v657_v3 = vmul.f32 0.2, %v641_v57 }
 0x177   : > { %v643_v4 = vadd.f32 %v1183_v0, %v622_v59  ;;  %v644_v5 = vadd.f32 %v1183_v0, %v623_v60  ;;  %v625_v6 = vmul.f32 %v1181_v58, %v604_v61  ;;  %v672_v7 = vmax.f32 %v640_v54, %v656_v62 }
 0x178   : > { %938 = vst [vmem:[%s1254_s4 + $0x18] sm:$0xff] %v914_v53   ;;  %v658_v8 = vmul.f32 0.2, %v642_v63  ;;  %v645_v9 = vadd.f32 %v1183_v0, %v624_v1  ;;  %v626_v10 = vmul.f32 %v1181_v58, %v605_v2  ;;  %v673_v11 = vmax.f32 %v641_v57, %v657_v3 }
 0x179   : > { %v659_v12 = vmul.f32 0.2, %v643_v4  ;;  %v660_v13 = vmul.f32 0.2, %v644_v5  ;;  %v646_v14 = vadd.f32 %v1183_v0, %v625_v6 }
 0x17a   : > { %v674_v15 = vmax.f32 %v642_v63, %v658_v8  ;;  %v661_v16 = vmul.f32 0.2, %v645_v9  ;;  %v647_v17 = vadd.f32 %v1183_v0, %v626_v10  ;;  %v919_v19 = vpack.c.bf16 %v673_v11, %v672_v7 }
 0x17b   : > { %v675_v20 = vmax.f32 %v643_v4, %v659_v12  ;;  %v676_v21 = vmax.f32 %v644_v5, %v660_v13  ;;  %v662_v23 = vmul.f32 0.2, %v646_v14 }
 0x17c   : > { %v677_v24 = vmax.f32 %v645_v9, %v661_v16  ;;  %v663_v25 = vmul.f32 0.2, %v647_v17  ;;  %939 = vst [vmem:[%s1254_s4 + $0x20] sm:$0xff] %v919_v19  }
 0x17d   : > { %v924_v58 = vpack.c.bf16 %v675_v20, %v674_v15  ;;  %v678_v26 = vmax.f32 %v646_v14, %v662_v23 }
 0x17e   : > { %v929_v18 = vpack.c.bf16 %v677_v24, %v676_v21  ;;  %v679_v27 = vmax.f32 %v647_v17, %v663_v25 }
 0x17f   : > { %940 = vst [vmem:[%s1254_s4 + $0x28] sm:$0xff] %v924_v58  }
 0x180   : > { %941 = vst [vmem:[%s1254_s4 + $0x30] sm:$0xff] %v929_v18   ;;  %v934_v0 = vpack.c.bf16 %v679_v27, %v678_v26 }
 0x182   : > { %942 = vst [vmem:[%s1254_s4 + $0x38] sm:$0xff] %v934_v0  }
 0x183 PF: > { %s14_s17 = sadd.s32 1, %s1072_s17   ;;  %s1255_s15 = smov %s1068_s16 }
 0x184   : > { %p11_p7 = scmp.ge.s32.totalorder %s14_s17, 4   ;;  %s1256_s16 = smov %s1258_s18 }
 0x186   :  { %13 = sbr.rel (!%p11_p7) target bundleno = 2 (0x2), region = 84 }

</bundles_post_ra>
